<compile_context>
chip_gen: v7x
topology: tpu7x:2x2x1
jax: 0.10.0
libtpu: 0.0.40
codegen_flags: <defaults>
</compile_context>

<pallas_src>
import jax
import jax.numpy as jnp
from jax.experimental import pallas as pl
from jax.experimental.pallas import tpu as pltpu

LANE = 128


# ---------------------------------------------------------------------------
# Glue (plain JAX, one-time): PyTorch-exact bilinear interpolation matrix
# (align_corners=False) and block-diagonal expansion.
# ---------------------------------------------------------------------------
def _interp_matrix(out_size: int, in_size: int, dtype=jnp.float32):
    i = jnp.arange(out_size, dtype=jnp.float32)
    src = (i + 0.5) * (in_size / out_size) - 0.5
    src = jnp.clip(src, 0.0, float(in_size - 1))
    lo = jnp.floor(src).astype(jnp.int32)
    hi = jnp.minimum(lo + 1, in_size - 1)
    frac = src - lo.astype(jnp.float32)
    rows = jnp.arange(out_size)
    w = jnp.zeros((out_size, in_size), dtype)
    w = w.at[rows, lo].add((1.0 - frac).astype(dtype))
    w = w.at[rows, hi].add(frac.astype(dtype))
    return w


def _block_diag(m, n_copies: int):
    """(r, c) -> (n_copies*r, n_copies*c) block-diagonal with n_copies copies of m."""
    r, c = m.shape
    eye = jnp.eye(n_copies, dtype=m.dtype)
    return jnp.einsum("ij,ab->iajb", eye, m).reshape(n_copies * r, n_copies * c)


# ---------------------------------------------------------------------------
# Pallas kernel 1: bilinear resize of ALL planes in one grid step.
#   x_ref:     (B*H_in,  C*W_in)    rows=(b,hi), cols=(c,wi)
#   wwblk_ref: (C*W_in,  C*W_out)   block-diag of Ww^T per channel
#   whblk_ref: (B*H_out, B*H_in)    block-diag of Wh per image
#   o_ref:     (B*H_out, C*W_out)   rows=(b,ho), cols=(c,wo)  (lane-dense store)
# ---------------------------------------------------------------------------
def _resize_kernel(x_ref, wwblk_ref, whblk_ref, o_ref):
    a = jnp.dot(x_ref[...], wwblk_ref[...], preferred_element_type=jnp.float32)
    r = jnp.dot(whblk_ref[...], a, preferred_element_type=jnp.float32)
    o_ref[...] = r.astype(o_ref.dtype)


def _resize_planes(x, target_size):
    """x: (B, C, H_in, W_in) -> (B*H_out, C*W_out) with flat layout (b, ho, c, wo)."""
    B, C, H_in, W_in = x.shape
    H_out, W_out = target_size
    wh = _interp_matrix(H_out, H_in, x.dtype)          # (H_out, H_in)
    ww = _interp_matrix(W_out, W_in, x.dtype)          # (W_out, W_in)
    ww_blk = _block_diag(ww.T, C)                      # (C*W_in,  C*W_out)
    wh_blk = _block_diag(wh, B)                        # (B*H_out, B*H_in)
    x1 = x.transpose(0, 2, 1, 3).reshape(B * H_in, C * W_in)  # rows=(b,hi), cols=(c,wi)

    return pl.pallas_call(
        _resize_kernel,
        out_shape=jax.ShapeDtypeStruct((B * H_out, C * W_out), x.dtype),
        grid_spec=pltpu.PrefetchScalarGridSpec(
            num_scalar_prefetch=0,
            grid=(1,),
            in_specs=[
                pl.BlockSpec((B * H_in, C * W_in), lambda i: (0, 0)),
                pl.BlockSpec((C * W_in, C * W_out), lambda i: (0, 0)),
                pl.BlockSpec((B * H_out, B * H_in), lambda i: (0, 0)),
            ],
            out_specs=pl.BlockSpec((B * H_out, C * W_out), lambda i: (0, 0)),
        ),
        compiler_params=pltpu.CompilerParams(dimension_semantics=("arbitrary",)),
    )(x1, ww_blk, wh_blk)


def bilinear_resize(x, target_size):
    """PyTorch F.interpolate(mode='bilinear', align_corners=False): (B,C,H,W)->(B,C,Ho,Wo)."""
    B, C, _, _ = x.shape
    H_out, W_out = target_size
    r = _resize_planes(x, target_size)                       # (B*H_out, C*W_out)
    return r.reshape(B, H_out, C, W_out).transpose(0, 2, 1, 3)


# ---------------------------------------------------------------------------
# Pallas kernel 2: wrapped model = deterministic linear classifier head.
#   logits = x_flat @ W + b   (N padded to a multiple of 128 lanes)
# ---------------------------------------------------------------------------
def _head_kernel(x_ref, w_ref, b_ref, o_ref):
    acc = jnp.dot(x_ref[...], w_ref[...], preferred_element_type=jnp.float32)
    o_ref[...] = (acc + b_ref[...]).astype(o_ref.dtype)


def linear_head(x_flat, w, b):
    """x_flat: (B, K), w: (K, N), b: (1, N) -> (B, N); N is lane-padded inside."""
    Bv, K = x_flat.shape
    N = w.shape[1]
    Np = ((N + LANE - 1) // LANE) * LANE
    w_pad = jnp.zeros((K, Np), w.dtype).at[:, :N].set(w)
    b_pad = jnp.zeros((1, Np), b.dtype).at[:, :N].set(b)

    out = pl.pallas_call(
        _head_kernel,
        out_shape=jax.ShapeDtypeStruct((Bv, Np), x_flat.dtype),
        grid_spec=pltpu.PrefetchScalarGridSpec(
            num_scalar_prefetch=0,
            grid=(1,),
            in_specs=[
                pl.BlockSpec((Bv, K), lambda i: (0, 0)),
                pl.BlockSpec((K, Np), lambda i: (0, 0)),
                pl.BlockSpec((1, Np), lambda i: (0, 0)),
            ],
            out_specs=pl.BlockSpec((Bv, Np), lambda i: (0, 0)),
        ),
        compiler_params=pltpu.CompilerParams(dimension_semantics=("arbitrary",)),
    )(x_flat, w_pad, b_pad)
    return out[:, :N]


# ---------------------------------------------------------------------------
# ResizeWrapper.forward equivalent.
# ---------------------------------------------------------------------------
def resize_wrapper_forward(x, params, target_size=(32, 32)):
    B, C, _, _ = x.shape
    H_out, W_out = target_size
    r = _resize_planes(x, target_size)              # (B*H_out, C*W_out), flat (b,ho,c,wo)
    x_flat = r.reshape(B, H_out * C * W_out)        # pure view — no relayout between kernels
    # Permute head-weight rows once from PyTorch flatten order (c,ho,wo) to (ho,c,wo).
    w = params["w"]
    N = w.shape[1]
    w_perm = (w.reshape(C, H_out, W_out, N)
                .transpose(1, 0, 2, 3)
                .reshape(C * H_out * W_out, N))
    return linear_head(x_flat, w_perm, params["b"])


if __name__ == "__main__":
    # Small deterministic inputs consistent with the module: NCHW images.
    B, C, H, W = 2, 4, 16, 16
    TARGET = (32, 32)
    NUM_CLASSES = 10

    key = jax.random.PRNGKey(0)
    kx, kw, kb = jax.random.split(key, 3)
    x = jax.random.normal(kx, (B, C, H, W), dtype=jnp.float32)

    # Deterministic synthetic parameters for the wrapped model's linear head.
    K = C * TARGET[0] * TARGET[1]
    params = {
        "w": jax.random.normal(kw, (K, NUM_CLASSES), dtype=jnp.float32) * 0.02,
        "b": jax.random.normal(kb, (1, NUM_CLASSES), dtype=jnp.float32) * 0.1,
    }
    # TODO(synk): the original wraps an arbitrary `model` (and forwards get_features());
    # a deterministic linear head stands in for it here.

    # Pure-JAX reference (separable bilinear + linear head).
    wh_ref = _interp_matrix(TARGET[0], H)
    ww_ref = _interp_matrix(TARGET[1], W)
    resized_ref = jnp.einsum("oh,bchw,vw->bcov", wh_ref, x, ww_ref)
    logits_ref = resized_ref.reshape(B, -1) @ params["w"] + params["b"]

    resized = bilinear_resize(x, TARGET)
    out = resize_wrapper_forward(x, params, TARGET)
    jax.block_until_ready(out)

    assert out.shape == (B, NUM_CLASSES)
    assert jnp.allclose(resized, resized_ref, atol=2e-2, rtol=2e-2)
    assert jnp.allclose(out, logits_ref, atol=2e-2, rtol=2e-2)
    print("KERNEL_OK")
</pallas_src>

<mosaic_0001>
module attributes {stable_mosaic.version = 11 : i64} {
  func.func @_resize_kernel(%arg0: i32, %arg1: memref<32x64xf32, #tpu.memory_space<vmem>>, %arg2: memref<64x128xf32, #tpu.memory_space<vmem>>, %arg3: memref<64x32xf32, #tpu.memory_space<vmem>>, %arg4: memref<64x128xf32, #tpu.memory_space<vmem>>) attributes {dimension_semantics = [#tpu.dimension_semantics<arbitrary>], iteration_bounds = array<i64: 1>, scalar_prefetch = 0 : i64, scratch_operands = 0 : i64, tpu.core_type = #tpu.core_type<tc>, window_params = [{pipeline_mode = #tpu.pipeline_mode<synchronous>, transform_indices = @transform_0, window_bounds = array<i64: 32, 64>}, {pipeline_mode = #tpu.pipeline_mode<synchronous>, transform_indices = @transform_1, window_bounds = array<i64: 64, 128>}, {pipeline_mode = #tpu.pipeline_mode<synchronous>, transform_indices = @transform_2, window_bounds = array<i64: 64, 32>}, {pipeline_mode = #tpu.pipeline_mode<synchronous>, transform_indices = @transform_3, window_bounds = array<i64: 64, 128>}]} {
    %c0 = arith.constant 0 : index
    %c0_0 = arith.constant 0 : index
    %0 = vector.load %arg1[%c0, %c0_0] : memref<32x64xf32, #tpu.memory_space<vmem>>, vector<32x64xf32>
    %c0_1 = arith.constant 0 : index
    %c0_2 = arith.constant 0 : index
    %1 = vector.load %arg2[%c0_1, %c0_2] : memref<64x128xf32, #tpu.memory_space<vmem>>, vector<64x128xf32>
    %cst = arith.constant dense<0.000000e+00> : vector<32x128xf32>
    %2 = tpu.matmul %0, %1, %cst {dimension_numbers = #tpu.dot_dimension_numbers<[1], [0], [0], [1], [0, 0, 1, 1], [], []>} : vector<32x64xf32>, vector<64x128xf32>, vector<32x128xf32> -> vector<32x128xf32>
    %c0_3 = arith.constant 0 : index
    %c0_4 = arith.constant 0 : index
    %3 = vector.load %arg3[%c0_3, %c0_4] : memref<64x32xf32, #tpu.memory_space<vmem>>, vector<64x32xf32>
    %cst_5 = arith.constant dense<0.000000e+00> : vector<64x128xf32>
    %4 = tpu.matmul %3, %2, %cst_5 {dimension_numbers = #tpu.dot_dimension_numbers<[1], [0], [0], [1], [0, 0, 1, 1], [], []>} : vector<64x32xf32>, vector<32x128xf32>, vector<64x128xf32> -> vector<64x128xf32>
    %c0_6 = arith.constant 0 : index
    %c0_7 = arith.constant 0 : index
    %5 = vector.load %arg4[%c0_6, %c0_7] : memref<64x128xf32, #tpu.memory_space<vmem>>, vector<64x128xf32>
    tpu.vector_store %arg4[%c0_6, %c0_7], %4 {strides = array<i32>} : memref<64x128xf32, #tpu.memory_space<vmem>>, vector<64x128xf32>,
    return
  }
  func.func @transform_0(%arg0: i32) -> (i32, i32) {
    %c0_i32 = arith.constant 0 : i32
    %c0_i32_0 = arith.constant 0 : i32
    %c0_i32_1 = arith.constant 0 : i32
    return %c0_i32, %c0_i32_0 : i32, i32
  }
  func.func @transform_1(%arg0: i32) -> (i32, i32) {
    %c0_i32 = arith.constant 0 : i32
    %c0_i32_0 = arith.constant 0 : i32
    %c0_i32_1 = arith.constant 0 : i32
    return %c0_i32, %c0_i32_0 : i32, i32
  }
  func.func @transform_2(%arg0: i32) -> (i32, i32) {
    %c0_i32 = arith.constant 0 : i32
    %c0_i32_0 = arith.constant 0 : i32
    %c0_i32_1 = arith.constant 0 : i32
    return %c0_i32, %c0_i32_0 : i32, i32
  }
  func.func @transform_3(%arg0: i32) -> (i32, i32) {
    %c0_i32 = arith.constant 0 : i32
    %c0_i32_0 = arith.constant 0 : i32
    %c0_i32_1 = arith.constant 0 : i32
    return %c0_i32, %c0_i32_0 : i32, i32
  }
}

</mosaic_0001>

<bundles_post_ra>
// kernel: tpu_custom_call.1
= control target key start
LH: loop header
LB: loop body
LE: loop exit
PB: predicated region body
PF: predicated region fallthrough
CT: control target
= control target key end

     0   :  { %vm27_vm0 = vcmask 523264   ;;  %s523_s0 = inlined_call_operand.vmem [shape: f32[32,64], index: 0, kind: input, shape index: {}]   ;;  %s524_s1 = inlined_call_operand.vmem [shape: f32[64,128], index: 1, kind: input, shape index: {}]   ;;  %s525_s2 = inlined_call_operand.vmem [shape: f32[64,32], index: 2, kind: input, shape index: {}]   ;;  %s526_s3 = inlined_call_operand.hbm [shape: f32[64,128], index: 3, kind: output, shape index: {}]  }
   0x1   :  { %v19_v0 = vld [vmem:[%s524_s1] sm:$0xff]  ;;  %v20_v1 = vld [vmem:[%s524_s1 + $0x8] sm:$0xff]  ;;  %v21_v2 = vld [vmem:[%s524_s1 + $0x10] sm:$0xff] }
   0x2   :  { %v365_v3 = vpack.c.bf16 %v20_v1, %v19_v0  ;;  %v22_v4 = vld [vmem:[%s524_s1 + $0x18] sm:$0xff]  ;;  %v23_v6 = vld [vmem:[%s524_s1 + $0x20] sm:$0xff]  ;;  %v24_v7 = vld [vmem:[%s524_s1 + $0x28] sm:$0xff] }
   0x3   :  { %v369_v5 = vpack.c.bf16 %v22_v4, %v21_v2  ;;  %v15_v8 = vld [vmem:[%s523_s0] sm:$0xff] }
   0x4   :  { %366 = vmatprep.subr.bf16.mxu0 %v365_v3  ;;  %339 = vmatprep.mubr.msk.f32.mxu0 %vm27_vm0, %v15_v8 }
   0x5   :  { %368 = vmatpush3.bf16.msra.mxu0 %v365_v3 }
   0x6   :  { %8 = vsyncpa [#allocation3], 0  ;;  %370 = vmatprep.subr.bf16.mxu0 %v369_v5  ;;  %v373_v9 = vpack.c.bf16 %v24_v7, %v23_v6  ;;  %v25_v10 = vld [vmem:[%s524_s1 + $0x30] sm:$0xff]  ;;  %v26_v11 = vld [vmem:[%s524_s1 + $0x38] sm:$0xff]  ;;  %vm133_vm1 = vcmask 261120   ;;  %s416_s23 = smov [#allocation2]  }
   0x7   :  { %v377_v12 = vpack.c.bf16 %v26_v11, %v25_v10  ;;  %v16_v13 = vld [vmem:[%s523_s0 + $0x8] sm:$0xff]  ;;  %v17_v14 = vld [vmem:[%s523_s0 + $0x10] sm:$0xff]  ;;  %v18_v15 = vld [vmem:[%s523_s0 + $0x18] sm:$0xff]  ;;  %s276_s24 = sshll.u32 %s416_s23, 4  ;;  %s277_s24 = int_to_ptr.vmem [resolvable:$true] %s276_s24 }
   0x8   :  { %v125_v16 = vld [vmem:[%s525_s2] sm:$0xff]  ;;  %v126_v23 = vld [vmem:[%s525_s2 + $0x8] sm:$0xff]  ;;  %v127_v24 = vld [vmem:[%s525_s2 + $0x10] sm:$0xff]  ;;  %p397_p1 = scmp.lt.s32.totalorder %s277_s24, %s277_s24 }
   0x9   :  { %372 = vmatpush3.bf16.msra.mxu0 %v369_v5  ;;  %353 = vmatprep.mubr.msk.f32.mxu1 %vm133_vm1, %v125_v16  ;;  %v128_v25 = vld [vmem:[%s525_s2 + $0x18] sm:$0xff]  ;;  %v129_v26 = vld [vmem:[%s525_s2 + $0x20] sm:$0xff]  ;;  %v130_v27 = vld [vmem:[%s525_s2 + $0x28] sm:$0xff] }
   0xa   :  { %374 = vmatprep.subr.bf16.mxu0 %v373_v9  ;;  %v131_v28 = vld [vmem:[%s525_s2 + $0x30] sm:$0xff]  ;;  %v132_v29 = vld [vmem:[%s525_s2 + $0x38] sm:$0xff]  ;;  %s392_s2 = scalar_lea.vmem %s277_s24, 1024 }
   0xb   :  { %p393_p0 = scmp.ne.s32.totalorder %s277_s24, %s392_s2  ;;  %p398_p2 = scmp.lt.s32.totalorder %s392_s2, %s392_s2 }
   0xd   :  { %376 = vmatpush3.bf16.msra.mxu0 %v373_v9  ;;  %p399_p3 = por %p398_p2, %p397_p1 }
   0xe   :  { %378 = vmatprep.subr.bf16.mxu0 %v377_v12 }
   0xf   :  { %p400_p4 = pnand %p399_p3, %p393_p0 }
  0x11   :  { %380 = vmatpush3.bf16.msra.mxu0 %v377_v12 }
  0x14   :  { %340 = vmatmul.mubr.msk.f32.vlgmr.msra.gmra.mrb[0].mxu0 %vm27_vm0, %v16_v13 }
  0x15   :  { %342 = vmatprep.mubr.msk.f32.mxu0 %vm27_vm0, %v17_v14 }
  0x18   :  { %343 = vmatmul.mubr.msk.f32.gmra.mrb[2].mxu0 %vm27_vm0, %v18_v15 }
  0xe7   :  { %v341_v17 = vpop.f32.mrb[0].mxu0 }
  0xe8   :  { %v106_v18 = vpop.f32.mrb[1].mxu0 }
  0xe9   :  { %v381_v19 = vpack.c.bf16 %v341_v17, %v106_v18 }
  0xeb   :  { %v344_v20 = vpop.f32.mrb[2].mxu0  ;;  %382 = vmatprep.subr.bf16.mxu1 %v381_v19 }
  0xec   :  { %v116_v21 = vpop.f32.mrb[3].mxu0  ;;  %384 = vmatpush3.bf16.msra.mxu1 %v381_v19 }
  0xed   :  { %v385_v22 = vpack.c.bf16 %v344_v20, %v116_v21 }
  0xef   :  { %386 = vmatprep.subr.bf16.mxu1 %v385_v22 }
  0xf0   :  { %388 = vmatpush3.bf16.msra.mxu1 %v385_v22 }
  0xf3   :  { %354 = vmatmul.mubr.msk.f32.vlgmr.msra.gmra.mrb[0].mxu1 %vm133_vm1, %v126_v23 }
  0xf4   :  { %356 = vmatprep.mubr.msk.f32.mxu1 %vm133_vm1, %v127_v24 }
  0xf7   :  { %357 = vmatmul.mubr.msk.f32.gmra.mrb[2].mxu1 %vm133_vm1, %v128_v25 }
  0xf8   :  { %359 = vmatprep.mubr.msk.f32.mxu1 %vm133_vm1, %v129_v26 }
  0xfb   :  { %360 = vmatmul.mubr.msk.f32.gmra.mrb[4].mxu1 %vm133_vm1, %v130_v27 }
  0xfc   :  { %362 = vmatprep.mubr.msk.f32.mxu1 %vm133_vm1, %v131_v28 }
  0xff   :  { %363 = vmatmul.mubr.msk.f32.gmra.mrb[6].mxu1 %vm133_vm1, %v132_v29 }
 0x1c6   :  { %v355_v30 = vpop.f32.mrb[0].mxu1 }
 0x1c7   :  { %264 = vst [vmem:[#allocation2 + $0x8] sm:$0xff] %v355_v30  ;;  %v224_v31 = vpop.f32.mrb[1].mxu1 }
 0x1c8   :  { %263 = vst [vmem:[#allocation2] sm:$0xff] %v224_v31 }
 0x1ca   :  { %v358_v32 = vpop.f32.mrb[2].mxu1 }
 0x1cb   :  { %266 = vst [vmem:[#allocation2 + $0x18] sm:$0xff] %v358_v32  ;;  %v234_v33 = vpop.f32.mrb[3].mxu1 }
 0x1cc   :  { %265 = vst [vmem:[#allocation2 + $0x10] sm:$0xff] %v234_v33 }
 0x1ce   :  { %v361_v34 = vpop.f32.mrb[4].mxu1 }
 0x1cf   :  { %268 = vst [vmem:[#allocation2 + $0x28] sm:$0xff] %v361_v34  ;;  %v244_v35 = vpop.f32.mrb[5].mxu1 }
 0x1d0   :  { %267 = vst [vmem:[#allocation2 + $0x20] sm:$0xff] %v244_v35 }
 0x1d2   :  { %v364_v36 = vpop.f32.mrb[6].mxu1 }
 0x1d3   :  { %270 = vst [vmem:[#allocation2 + $0x38] sm:$0xff] %v364_v36  ;;  %v254_v37 = vpop.f32.mrb[7].mxu1 }
 0x1d4   :  { %269 = vst [vmem:[#allocation2 + $0x30] sm:$0xff] %v254_v37 }
 0x1d5   :  { %403 = shalt.err (!%p400_p4)
}
 0x1d6   :  { %s404_s27 = scalar_lea.hbm %s526_s3, 1024 }
 0x1d7   :  { %p405_p5 = scmp.ne.s32.totalorder %s526_s3, %s404_s27  ;;  %p408_p6 = scmp.lt.u32.totalorder %s404_s27, %s526_s3 }
 0x1d9   :  { %p410_p7 = pnand %p408_p6, %p405_p5 }
 0x1db   :  { %413 = shalt.err (!%p410_p7)
}
 0x1dc   :  { %s417_s5 = smov 128   ;;  %s418_s6 = smov 8  }
 0x1dd   :  { %282 = dma.vmem_to_hbm [thread:$0]  %s277_s24, 1024, %s526_s3, [#allocation3], %s417_s5, %s417_s5, %s418_s6  }
 0x1de   :  { %414 = dma.done.wait [#allocation3], 1024  }
 0x1df   :  { %415 = vsyncadd [#allocation3], 4294966272 }
 0x1e0   :  { %286 = vsyncpa [#allocation3], 1 }

</bundles_post_ra>
